<compile_context>
chip_gen: v7x
topology: tpu7x:2x2x1
jax: 0.10.0
libtpu: 0.0.40
codegen_flags: <defaults>
</compile_context>

<pallas_src>
import jax
import jax.numpy as jnp
from jax.experimental import pallas as pl
from jax.experimental.pallas import tpu as pltpu

_LANE = 128


def _chomp_copy_kernel(x_ref, o_ref):
    # Input and output blocks have identical shapes: straight VMEM copy.
    o_ref[...] = x_ref[...]


def _vmem_capacity_bytes() -> int:
    """Physical VMEM per core; conservative (v7x) fallback if the query fails."""
    try:
        return int(pltpu.get_tpu_info().vmem_capacity_bytes)
    except Exception:  # interpret mode / older jax / unknown chip
        return 64 * 1024 * 1024


def _choose_tiles(rows, l_out, itemsize, target):
    """Pick (row_tile, lane_tile) so one block is ~`target` bytes."""
    sub = max(8, 32 // itemsize)          # sublane pack: f32->8, bf16->16, i8->32
    padded_lout = _LANE * pl.cdiv(l_out, _LANE)

    # Widest lane tile such that even a minimal sub-row slab fits the target.
    max_lanes = max(_LANE, (target // (sub * itemsize)) // _LANE * _LANE)
    if padded_lout <= max_lanes:
        # Single L tile: zero tail read when lane aligned, else <128 over-read lanes.
        tl = l_out if l_out % _LANE == 0 else padded_lout
    else:
        # Very long sequences: balance L tiles so the last one is not tiny.
        n_lt = pl.cdiv(padded_lout, max_lanes)
        tl = pl.cdiv(pl.cdiv(l_out, n_lt), _LANE) * _LANE

    tr = min(rows, max(sub, (target // (tl * itemsize)) // sub * sub))

    # If the whole array fits in one block, split the rows once so megacore
    # chips (v7x) shard the copy across both TensorCores; costs at most one
    # extra ~0.35 us grid step on single-TC v5e/v6e.
    if pl.cdiv(rows, tr) * pl.cdiv(l_out, tl) == 1 and rows >= 2 * sub:
        tr = pl.cdiv(pl.cdiv(rows, 2), sub) * sub
    return tr, tl


def chomp1d(x: jax.Array, chomp_size: int) -> jax.Array:
    """Equivalent of Chomp1d(chomp_size).forward(x) for x of shape (N, C, L)."""
    n, c, l = x.shape
    if chomp_size == 0:
        # NOTE: literal PyTorch `x[:, :, :-0]` would be empty; Chomp1d is never
        # instantiated with 0 in TCN, so treat it as the (intended) identity.
        return x
    assert 0 < chomp_size <= l, "chomp_size must be in (0, L]"
    l_out = l - chomp_size
    if l_out == 0:
        return x[:, :, :0]                 # PyTorch chomp_size == L edge case

    rows = n * c
    itemsize = jnp.dtype(x.dtype).itemsize
    xf = x.reshape(rows, l)                # free: merge of leading dims

    vmem_cap = _vmem_capacity_bytes()
    target = max(2 << 20, min(8 << 20, vmem_cap // 16))   # per-buffer bytes
    tr, tl = _choose_tiles(rows, l_out, itemsize, target)
    grid = (pl.cdiv(rows, tr), pl.cdiv(l_out, tl))

    block_bytes = tr * tl * itemsize       # in block == out block size
    vmem_limit = min(vmem_cap * 3 // 4, 4 * block_bytes + (4 << 20))
    vmem_limit = max(vmem_limit, 16 << 20)

    out = pl.pallas_call(
        _chomp_copy_kernel,
        out_shape=jax.ShapeDtypeStruct((rows, l_out), x.dtype),
        grid_spec=pltpu.PrefetchScalarGridSpec(
            num_scalar_prefetch=0,
            grid=grid,
            in_specs=[pl.BlockSpec((tr, tl), lambda r, li: (r, li))],
            out_specs=pl.BlockSpec((tr, tl), lambda r, li: (r, li)),
        ),
        compiler_params=pltpu.CompilerParams(
            dimension_semantics=("parallel", "parallel"),
            vmem_limit_bytes=int(vmem_limit),
        ),
        cost_estimate=pl.CostEstimate(
            flops=0,
            transcendentals=0,
            bytes_accessed=2 * rows * l_out * itemsize,
        ),
    )(xf)
    return out.reshape(n, c, l_out)        # free: split of leading dim


if __name__ == "__main__":
    key = jax.random.PRNGKey(0)

    # Case 1: small TCN-like shape, L_out not lane aligned (padded partial tile).
    N, C, L, chomp = 2, 4, 16, 3
    x = jax.random.normal(key, (N, C, L), dtype=jnp.float32)
    y = jax.block_until_ready(chomp1d(x, chomp))
    assert y.shape == (N, C, L - chomp)
    assert y.dtype == x.dtype
    assert bool(jnp.array_equal(y, x[:, :, :-chomp]))

    # Case 2: L_out % 128 == 0 -> chomped tail is never read; row split path.
    N2, C2, L2, chomp2 = 2, 8, 131, 3
    x2 = jax.random.normal(jax.random.PRNGKey(1), (N2, C2, L2), dtype=jnp.float32)
    y2 = jax.block_until_ready(chomp1d(x2, chomp2))
    assert bool(jnp.array_equal(y2, x2[:, :, :-chomp2]))

    # Case 3: bf16 (sublane pack 16) with lane-aligned L_out.
    N3, C3, L3, chomp3 = 2, 16, 300, 44
    x3 = jax.random.normal(jax.random.PRNGKey(2), (N3, C3, L3), dtype=jnp.bfloat16)
    y3 = jax.block_until_ready(chomp1d(x3, chomp3))
    assert bool(jnp.array_equal(y3, x3[:, :, :-chomp3]))

    # Case 4: chomp_size == 0 treated as identity (documented deviation).
    y4 = chomp1d(x, 0)
    assert bool(jnp.array_equal(y4, x))

    print("KERNEL_OK")
</pallas_src>

<mosaic_0001>
module attributes {stable_mosaic.version = 11 : i64} {
  func.func @_chomp_copy_kernel(%arg0: i32, %arg1: i32, %arg2: memref<8x128xf32, #tpu.memory_space<vmem>>, %arg3: memref<8x128xf32, #tpu.memory_space<vmem>>) attributes {dimension_semantics = [#tpu.dimension_semantics<parallel>, #tpu.dimension_semantics<parallel>], iteration_bounds = array<i64: 1, 1>, scalar_prefetch = 0 : i64, scratch_operands = 0 : i64, tpu.core_type = #tpu.core_type<tc>, window_params = [{transform_indices = @transform_0, window_bounds = array<i64: 8, 128>}, {transform_indices = @transform_1, window_bounds = array<i64: 8, 128>}]} {
    %c0 = arith.constant 0 : index
    %c0_0 = arith.constant 0 : index
    %0 = vector.load %arg2[%c0, %c0_0] : memref<8x128xf32, #tpu.memory_space<vmem>>, vector<8x128xf32>
    %c0_1 = arith.constant 0 : index
    %c0_2 = arith.constant 0 : index
    %1 = vector.load %arg3[%c0_1, %c0_2] : memref<8x128xf32, #tpu.memory_space<vmem>>, vector<8x128xf32>
    tpu.vector_store %arg3[%c0_1, %c0_2], %0 {strides = array<i32>} : memref<8x128xf32, #tpu.memory_space<vmem>>, vector<8x128xf32>,
    return
  }
  func.func @transform_0(%arg0: i32, %arg1: i32) -> (i32, i32) {
    %c0_i32 = arith.constant 0 : i32
    return %arg0, %arg1 : i32, i32
  }
  func.func @transform_1(%arg0: i32, %arg1: i32) -> (i32, i32) {
    %c0_i32 = arith.constant 0 : i32
    return %arg0, %arg1 : i32, i32
  }
}

</mosaic_0001>

<bundles_post_ra>
// kernel: tpu_custom_call.1
= control target key start
LH: loop header
LB: loop body
LE: loop exit
PB: predicated region body
PF: predicated region fallthrough
CT: control target
= control target key end

     0   :  { %6 = vsyncpa [#allocation3], 0  ;;  %s124_s0 = inlined_call_operand.hbm [shape: f32[8,16], index: 0, kind: input, shape index: {}]   ;;  %s125_s1 = inlined_call_operand.hbm [shape: f32[8,13], index: 1, kind: output, shape index: {}]  }
   0x1   :  { %7 = vsyncpa [#allocation4], 0  ;;  %s88_s6 = smov [#allocation2]   ;;  %s40_s10 = scalar_lea.hbm %s124_s0, 128 }
   0x2   :  { %s14_s7 = sshll.u32 %s88_s6, 4  ;;  %p41_p0 = scmp.ne.s32.totalorder %s124_s0, %s40_s10  ;;  %s15_s7 = int_to_ptr.vmem [resolvable:$true] %s14_s7 }
   0x3   :  { %p44_p1 = scmp.lt.u32.totalorder %s40_s10, %s124_s0 }
   0x5   :  { %p46_p2 = pnand %p44_p1, %p41_p0 }
   0x7   :  { %49 = shalt.err (!%p46_p2)
}
   0x8   :  { %s50_s15 = scalar_lea.vmem %s15_s7, 128  ;;  %p55_p4 = scmp.lt.s32.totalorder %s15_s7, %s15_s7 }
   0x9   :  { %p51_p3 = scmp.ne.s32.totalorder %s15_s7, %s50_s15  ;;  %p56_p5 = scmp.lt.s32.totalorder %s50_s15, %s50_s15 }
   0xb   :  { %p57_p6 = por %p56_p5, %p55_p4 }
   0xd   :  { %p58_p7 = pnand %p57_p6, %p51_p3 }
   0xf   :  { %61 = shalt.err (!%p58_p7)
}
  0x10   :  { %17 = dma.hbm_to_vmem [thread:$0]  %s124_s0, 128, %s15_s7, [#allocation3]  }
  0x11   :  { %84 = dma.done.wait [#allocation3], 128  }
  0x12   :  { %85 = vsyncadd [#allocation3], 4294967168  ;;  %s89_s18 = smov [#allocation5]   ;;  %v21_v0 = vld [vmem:[#allocation2] sm:$0xff] }
  0x13   :  { %s29_s19 = sshll.u32 %s89_s18, 4  ;;  %22 = vst [vmem:[#allocation5] sm:$0xff] %v21_v0  ;;  %s30_s19 = int_to_ptr.vmem [resolvable:$true] %s29_s19 }
  0x14   :  { %s62_s20 = scalar_lea.vmem %s30_s19, 128  ;;  %p67_p9 = scmp.lt.s32.totalorder %s30_s19, %s30_s19 }
  0x15   :  { %p63_p8 = scmp.ne.s32.totalorder %s30_s19, %s62_s20  ;;  %p68_p10 = scmp.lt.s32.totalorder %s62_s20, %s62_s20 }
  0x17   :  { %p69_p11 = por %p68_p10, %p67_p9 }
  0x19   :  { %p70_p12 = pnand %p69_p11, %p63_p8 }
  0x1b   :  { %73 = shalt.err (!%p70_p12)
}
  0x1c   :  { %s74_s23 = scalar_lea.hbm %s125_s1, 128 }
  0x1d   :  { %p75_p13 = scmp.ne.s32.totalorder %s125_s1, %s74_s23  ;;  %p78_p0 = scmp.lt.u32.totalorder %s74_s23, %s125_s1 }
  0x1f   :  { %p80_p1 = pnand %p78_p0, %p75_p13 }
  0x21   :  { %83 = shalt.err (!%p80_p1)
}
  0x22   :  { %32 = dma.vmem_to_hbm [thread:$0]  %s30_s19, 128, %s125_s1, [#allocation4]  }
  0x23   :  { %86 = dma.done.wait [#allocation4], 128  }
  0x24   :  { %87 = vsyncadd [#allocation4], 4294967168 }
  0x25   :  { %36 = vsyncpa [#allocation3], 1 }
  0x26   :  { %37 = vsyncpa [#allocation4], 1 }

</bundles_post_ra>
